<compile_context>
chip_gen: v7x
topology: tpu7x:2x2x1
jax: 0.10.0
libtpu: 0.0.40
codegen_flags: <defaults>
</compile_context>

<pallas_src>
import functools

import jax
import jax.numpy as jnp
from jax import lax
from jax.experimental import pallas as pl
from jax.experimental.pallas import tpu as pltpu


# ----------------------------------------------------------------------------
# Pallas kernel: one batch element per grid step (NCHW-native, spatial flattened
# onto the lane axis).
#   x_ref   : (1, C, H*W)        input image, spatial flattened (free reshape)
#   w_ref   : (Cout, 9C)         BN-folded conv weight, im2col column order
#   b_ref   : (Cout, 1)          BN-folded bias
#   o_ref   : (1, Cout, H*W)     output (lane-dense last dim)
#   xpad_ref: (C, H*W + 2W + 2)  VMEM scratch: flat zero-padded row buffer
#   patch_ref:(9C, H*W)          VMEM scratch: im2col patch matrix
# ----------------------------------------------------------------------------
def _conv_bn_hswish_kernel(x_ref, w_ref, b_ref, o_ref, xpad_ref, patch_ref, *,
                           H, W):
    C = x_ref.shape[1]
    HW = H * W
    PAD = W + 1          # flat pad of W+1 zeros per side covers the 3x3 halo

    # ---- in-kernel zero padding (replaces host-side jnp.pad / transposes) ----
    xpad_ref[:, 0:PAD] = jnp.zeros((C, PAD), xpad_ref.dtype)
    xpad_ref[:, PAD + HW:2 * PAD + HW] = jnp.zeros((C, PAD), xpad_ref.dtype)
    xpad_ref[:, PAD:PAD + HW] = x_ref[0].astype(xpad_ref.dtype)

    # ---- lane-index masks for the row-wrapping taps (hoisted, built once) ----
    col = lax.broadcasted_iota(jnp.int32, (C, HW), 1) % W
    left_ok = (col != 0).astype(jnp.float32)       # dw == 0: w-1 < 0 at w == 0
    right_ok = (col != W - 1).astype(jnp.float32)  # dw == 2: w+1 >= W at w == W-1

    # ---- build the (9C, HW) im2col patch from 9 lane-shifted slices ----------
    # tap(dh, dw)[c, h*W + w] == x_padded[c, h + dh, w + dw]  (stride 1, pad 1)
    for dh in range(3):
        for dw in range(3):
            t = dh * 3 + dw
            s = dh * W + dw
            tap = xpad_ref[:, s:s + HW].astype(jnp.float32)
            if dw == 0:
                tap = tap * left_ok
            elif dw == 2:
                tap = tap * right_ok
            patch_ref[t * C:(t + 1) * C, :] = tap.astype(patch_ref.dtype)

    # ---- single MXU matmul (f32 accumulation), folded BN bias, hardswish -----
    y = jnp.dot(w_ref[...], patch_ref[...].astype(w_ref.dtype),
                preferred_element_type=jnp.float32)
    y = y + b_ref[...].astype(jnp.float32)
    y = y * jnp.clip(y + 3.0, 0.0, 6.0) * (1.0 / 6.0)      # hardswish
    o_ref[0] = y.astype(o_ref.dtype)


@jax.jit
def baseconv_forward(x_nchw, w_comb, bias):
    """BaseConv forward (ksize=3, stride=1, groups=1, bias=False, act=hswish).

    x_nchw: (N, C, H, W) f32, w_comb: (Cout, 9C) BN-folded weight (f32 or bf16),
    bias: (Cout,) f32.  Returns (N, Cout, H, W) f32.
    """
    N, C, H, W = x_nchw.shape
    Cout, k9c = w_comb.shape
    assert k9c == 9 * C, "kernel implements the ksize=3 / stride=1 / groups=1 BaseConv"
    HW = H * W

    x_flat = x_nchw.reshape(N, C, HW)                  # contiguous -> free
    b2 = bias.reshape(Cout, 1).astype(jnp.float32)

    kernel = functools.partial(_conv_bn_hswish_kernel, H=H, W=W)

    out_flat = pl.pallas_call(
        kernel,
        out_shape=jax.ShapeDtypeStruct((N, Cout, HW), jnp.float32),
        grid=(N,),
        in_specs=[
            pl.BlockSpec((1, C, HW), lambda n: (n, 0, 0)),
            pl.BlockSpec((Cout, 9 * C), lambda n: (0, 0)),
            pl.BlockSpec((Cout, 1), lambda n: (0, 0)),
        ],
        out_specs=pl.BlockSpec((1, Cout, HW), lambda n: (n, 0, 0)),
        scratch_shapes=[
            pltpu.VMEM((C, HW + 2 * (W + 1)), jnp.float32),
            pltpu.VMEM((9 * C, HW), jnp.float32),
        ],
        compiler_params=pltpu.CompilerParams(
            dimension_semantics=("parallel",)),
    )(x_flat, w_comb, b2)

    return out_flat.reshape(N, Cout, H, W)             # contiguous -> free


# ----------------------------------------------------------------------------
# Parameter construction (deterministic) + BN folding (eval mode).
# ----------------------------------------------------------------------------
def make_params(key, C, Cout, eps=1e-5):
    ks = jax.random.split(key, 5)
    w = jax.random.uniform(ks[0], (Cout, C, 3, 3), jnp.float32, -0.5, 0.5)
    gamma = jax.random.uniform(ks[1], (Cout,), jnp.float32, 0.5, 1.5)
    beta = jax.random.uniform(ks[2], (Cout,), jnp.float32, -0.5, 0.5)
    mean = jax.random.uniform(ks[3], (Cout,), jnp.float32, -0.5, 0.5)
    var = jax.random.uniform(ks[4], (Cout,), jnp.float32, 0.5, 1.5)
    return dict(w=w, gamma=gamma, beta=beta, mean=mean, var=var, eps=eps)


def fold_conv_bn(p):
    """Fold eval-mode BN into the conv: returns (w_fold (Cout,C,3,3), b_fold (Cout,))."""
    scale = p["gamma"] / jnp.sqrt(p["var"] + p["eps"])
    w_fold = p["w"] * scale[:, None, None, None]
    b_fold = p["beta"] - p["mean"] * scale   # (conv has bias=False in BaseConv)
    return w_fold, b_fold


def pack_weight(w_fold, dtype):
    """(Cout, C, 3, 3) -> (Cout, 9C) with column index (dh*3 + dw)*C + c."""
    Cout, C = w_fold.shape[0], w_fold.shape[1]
    return jnp.transpose(w_fold, (0, 2, 3, 1)).reshape(Cout, 9 * C).astype(dtype)


# ----------------------------------------------------------------------------
# Pure-JAX reference (conv -> BN -> hardswish) for correctness checking.
# ----------------------------------------------------------------------------
def _hardswish(y):
    return y * jnp.clip(y + 3.0, 0.0, 6.0) / 6.0


def _conv3x3_nchw(x, w):
    return lax.conv_general_dilated(
        x, w, window_strides=(1, 1), padding=[(1, 1), (1, 1)],
        dimension_numbers=("NCHW", "OIHW", "NCHW"))


def reference_forward(x, p):
    y = _conv3x3_nchw(x, p["w"])
    scale = p["gamma"] / jnp.sqrt(p["var"] + p["eps"])
    y = y * scale[None, :, None, None] \
        + (p["beta"] - p["mean"] * scale)[None, :, None, None]
    return _hardswish(y)


if __name__ == "__main__":
    N, C, H, W, Cout = 2, 4, 16, 16, 8

    key = jax.random.PRNGKey(0)
    kx, kp = jax.random.split(key)
    x = jax.random.normal(kx, (N, C, H, W), jnp.float32)

    params = make_params(kp, C, Cout)
    w_fold, b_fold = fold_conv_bn(params)
    ref = jax.block_until_ready(reference_forward(x, params))

    # f32 MXU path (exactness check; also the right choice on v5e).
    out_f32 = jax.block_until_ready(
        baseconv_forward(x, pack_weight(w_fold, jnp.float32), b_fold))
    assert out_f32.shape == (N, Cout, H, W)
    assert jnp.allclose(out_f32, ref, atol=1e-3, rtol=1e-3), (
        float(jnp.max(jnp.abs(out_f32 - ref))))

    # bf16 MXU path (v6e / v7x): compare against a reference built from the
    # same bf16-rounded operands so only accumulation order differs.
    out_bf16 = jax.block_until_ready(
        baseconv_forward(x, pack_weight(w_fold, jnp.bfloat16), b_fold))
    x_q = x.astype(jnp.bfloat16).astype(jnp.float32)
    w_q = w_fold.astype(jnp.bfloat16).astype(jnp.float32)
    ref_bf16 = _hardswish(_conv3x3_nchw(x_q, w_q) + b_fold[None, :, None, None])
    assert jnp.allclose(out_bf16, ref_bf16, atol=1e-3, rtol=1e-3), (
        float(jnp.max(jnp.abs(out_bf16 - ref_bf16))))

    print("KERNEL_OK")
</pallas_src>

<mosaic_0001>
module attributes {stable_mosaic.version = 11 : i64} {
  func.func @_conv_bn_hswish_kernel(%arg0: i32, %arg1: memref<1x4x256xf32, #tpu.memory_space<vmem>>, %arg2: memref<8x36xf32, #tpu.memory_space<vmem>>, %arg3: memref<8x1xf32, #tpu.memory_space<vmem>>, %arg4: memref<1x8x256xf32, #tpu.memory_space<vmem>>, %arg5: memref<4x290xf32, #tpu.memory_space<vmem>>, %arg6: memref<36x256xf32, #tpu.memory_space<vmem>>) attributes {dimension_semantics = [#tpu.dimension_semantics<parallel>], iteration_bounds = array<i64: 2>, scalar_prefetch = 0 : i64, scratch_operands = 2 : i64, tpu.core_type = #tpu.core_type<tc>, window_params = [{transform_indices = @transform_0, window_bounds = array<i64: 1, 4, 256>}, {pipeline_mode = #tpu.pipeline_mode<synchronous>, transform_indices = @transform_1, window_bounds = array<i64: 8, 36>}, {pipeline_mode = #tpu.pipeline_mode<synchronous>, transform_indices = @transform_2, window_bounds = array<i64: 8, 1>}, {transform_indices = @transform_3, window_bounds = array<i64: 1, 8, 256>}]} {
    %cst = arith.constant 0.000000e+00 : f32
    %0 = vector.broadcast %cst : f32 to vector<4x17xf32>
    %c0 = arith.constant 0 : index
    %c0_0 = arith.constant 0 : index
    %1 = vector.load %arg5[%c0, %c0_0] : memref<4x290xf32, #tpu.memory_space<vmem>>, vector<4x17xf32>
    tpu.vector_store %arg5[%c0, %c0_0], %0 {strides = array<i32>} : memref<4x290xf32, #tpu.memory_space<vmem>>, vector<4x17xf32>,
    %cst_1 = arith.constant 0.000000e+00 : f32
    %2 = vector.broadcast %cst_1 : f32 to vector<4x17xf32>
    %c0_2 = arith.constant 0 : index
    %c273 = arith.constant 273 : index
    %3 = vector.load %arg5[%c0_2, %c273] : memref<4x290xf32, #tpu.memory_space<vmem>>, vector<4x17xf32>
    tpu.vector_store %arg5[%c0_2, %c273], %2 {strides = array<i32>} : memref<4x290xf32, #tpu.memory_space<vmem>>, vector<4x17xf32>,
    %c0_3 = arith.constant 0 : index
    %c0_4 = arith.constant 0 : index
    %c0_5 = arith.constant 0 : index
    %4 = vector.load %arg1[%c0_3, %c0_4, %c0_5] : memref<1x4x256xf32, #tpu.memory_space<vmem>>, vector<1x4x256xf32>
    %5 = vector.shape_cast %4 : vector<1x4x256xf32> to vector<4x256xf32>
    %c0_6 = arith.constant 0 : index
    %c17 = arith.constant 17 : index
    %6 = vector.load %arg5[%c0_6, %c17] : memref<4x290xf32, #tpu.memory_space<vmem>>, vector<4x256xf32>
    tpu.vector_store %arg5[%c0_6, %c17], %5 {strides = array<i32>} : memref<4x290xf32, #tpu.memory_space<vmem>>, vector<4x256xf32>,
    %7 = tpu.iota {dimensions = array<i32: 1>} : vector<4x256xi32>
    %c16_i32 = arith.constant 16 : i32
    %c0_i32 = arith.constant 0 : i32
    %8 = arith.cmpi eq, %c16_i32, %c0_i32 : i32
    %c1_i32 = arith.constant 1 : i32
    %9 = arith.select %8, %c1_i32, %c16_i32 : i32
    %10 = vector.broadcast %9 : i32 to vector<4x256xi32>
    %11 = arith.remsi %7, %10 : vector<4x256xi32>
    %c0_i32_7 = arith.constant 0 : i32
    %12 = vector.broadcast %c0_i32_7 : i32 to vector<4x256xi32>
    %13 = arith.cmpi ne, %11, %12 : vector<4x256xi32>
    %c0_i32_8 = arith.constant 0 : i32
    %14 = vector.broadcast %c0_i32_8 : i32 to vector<4x256xi32>
    %15 = arith.cmpi slt, %11, %14 : vector<4x256xi32>
    %c0_i32_9 = arith.constant 0 : i32
    %16 = arith.cmpi slt, %9, %c0_i32_9 : i32
    %17 = vector.broadcast %16 : i1 to vector<4x256xi1>
    %18 = vector.broadcast %17 : vector<4x256xi1> to vector<4x256xi1>
    %19 = arith.xori %15, %18 : vector<4x256xi1>
    %20 = arith.andi %19, %13 : vector<4x256xi1>
    %21 = vector.broadcast %9 : i32 to vector<4x256xi32>
    %22 = arith.addi %11, %21 : vector<4x256xi32>
    %23 = arith.select %20, %22, %11 : vector<4x256xi1>, vector<4x256xi32>
    %c0_i32_10 = arith.constant 0 : i32
    %24 = vector.broadcast %c0_i32_10 : i32 to vector<4x256xi32>
    %25 = arith.cmpi ne, %23, %24 : vector<4x256xi32>
    %26 = arith.extui %25 : vector<4x256xi1> to vector<4x256xi32>
    %27 = arith.sitofp %26 : vector<4x256xi32> to vector<4x256xf32>
    %c15_i32 = arith.constant 15 : i32
    %28 = vector.broadcast %c15_i32 : i32 to vector<4x256xi32>
    %29 = arith.cmpi ne, %23, %28 : vector<4x256xi32>
    %30 = arith.extui %29 : vector<4x256xi1> to vector<4x256xi32>
    %31 = arith.sitofp %30 : vector<4x256xi32> to vector<4x256xf32>
    %c0_11 = arith.constant 0 : index
    %c0_12 = arith.constant 0 : index
    %32 = vector.load %arg5[%c0_11, %c0_12] : memref<4x290xf32, #tpu.memory_space<vmem>>, vector<4x256xf32>
    %33 = arith.mulf %32, %27 : vector<4x256xf32>
    %c0_13 = arith.constant 0 : index
    %c0_14 = arith.constant 0 : index
    %34 = vector.load %arg6[%c0_13, %c0_14] : memref<36x256xf32, #tpu.memory_space<vmem>>, vector<4x256xf32>
    tpu.vector_store %arg6[%c0_13, %c0_14], %33 {strides = array<i32>} : memref<36x256xf32, #tpu.memory_space<vmem>>, vector<4x256xf32>,
    %c0_15 = arith.constant 0 : index
    %c1 = arith.constant 1 : index
    %35 = vector.load %arg5[%c0_15, %c1] : memref<4x290xf32, #tpu.memory_space<vmem>>, vector<4x256xf32>
    %c4 = arith.constant 4 : index
    %c0_16 = arith.constant 0 : index
    %36 = vector.load %arg6[%c4, %c0_16] : memref<36x256xf32, #tpu.memory_space<vmem>>, vector<4x256xf32>
    tpu.vector_store %arg6[%c4, %c0_16], %35 {strides = array<i32>} : memref<36x256xf32, #tpu.memory_space<vmem>>, vector<4x256xf32>,
    %c0_17 = arith.constant 0 : index
    %c2 = arith.constant 2 : index
    %37 = vector.load %arg5[%c0_17, %c2] : memref<4x290xf32, #tpu.memory_space<vmem>>, vector<4x256xf32>
    %38 = arith.mulf %37, %31 : vector<4x256xf32>
    %c8 = arith.constant 8 : index
    %c0_18 = arith.constant 0 : index
    %39 = vector.load %arg6[%c8, %c0_18] : memref<36x256xf32, #tpu.memory_space<vmem>>, vector<4x256xf32>
    tpu.vector_store %arg6[%c8, %c0_18], %38 {strides = array<i32>} : memref<36x256xf32, #tpu.memory_space<vmem>>, vector<4x256xf32>,
    %c0_19 = arith.constant 0 : index
    %c16 = arith.constant 16 : index
    %40 = vector.load %arg5[%c0_19, %c16] : memref<4x290xf32, #tpu.memory_space<vmem>>, vector<4x256xf32>
    %41 = arith.mulf %40, %27 : vector<4x256xf32>
    %c12 = arith.constant 12 : index
    %c0_20 = arith.constant 0 : index
    %42 = vector.load %arg6[%c12, %c0_20] : memref<36x256xf32, #tpu.memory_space<vmem>>, vector<4x256xf32>
    tpu.vector_store %arg6[%c12, %c0_20], %41 {strides = array<i32>} : memref<36x256xf32, #tpu.memory_space<vmem>>, vector<4x256xf32>,
    %c0_21 = arith.constant 0 : index
    %c17_22 = arith.constant 17 : index
    %43 = vector.load %arg5[%c0_21, %c17_22] : memref<4x290xf32, #tpu.memory_space<vmem>>, vector<4x256xf32>
    %c16_23 = arith.constant 16 : index
    %c0_24 = arith.constant 0 : index
    %44 = vector.load %arg6[%c16_23, %c0_24] : memref<36x256xf32, #tpu.memory_space<vmem>>, vector<4x256xf32>
    tpu.vector_store %arg6[%c16_23, %c0_24], %43 {strides = array<i32>} : memref<36x256xf32, #tpu.memory_space<vmem>>, vector<4x256xf32>,
    %c0_25 = arith.constant 0 : index
    %c18 = arith.constant 18 : index
    %45 = vector.load %arg5[%c0_25, %c18] : memref<4x290xf32, #tpu.memory_space<vmem>>, vector<4x256xf32>
    %46 = arith.mulf %45, %31 : vector<4x256xf32>
    %c20 = arith.constant 20 : index
    %c0_26 = arith.constant 0 : index
    %47 = vector.load %arg6[%c20, %c0_26] : memref<36x256xf32, #tpu.memory_space<vmem>>, vector<4x256xf32>
    tpu.vector_store %arg6[%c20, %c0_26], %46 {strides = array<i32>} : memref<36x256xf32, #tpu.memory_space<vmem>>, vector<4x256xf32>,
    %c0_27 = arith.constant 0 : index
    %c32 = arith.constant 32 : index
    %48 = vector.load %arg5[%c0_27, %c32] : memref<4x290xf32, #tpu.memory_space<vmem>>, vector<4x256xf32>
    %49 = arith.mulf %48, %27 : vector<4x256xf32>
    %c24 = arith.constant 24 : index
    %c0_28 = arith.constant 0 : index
    %50 = vector.load %arg6[%c24, %c0_28] : memref<36x256xf32, #tpu.memory_space<vmem>>, vector<4x256xf32>
    tpu.vector_store %arg6[%c24, %c0_28], %49 {strides = array<i32>} : memref<36x256xf32, #tpu.memory_space<vmem>>, vector<4x256xf32>,
    %c0_29 = arith.constant 0 : index
    %c33 = arith.constant 33 : index
    %51 = vector.load %arg5[%c0_29, %c33] : memref<4x290xf32, #tpu.memory_space<vmem>>, vector<4x256xf32>
    %c28 = arith.constant 28 : index
    %c0_30 = arith.constant 0 : index
    %52 = vector.load %arg6[%c28, %c0_30] : memref<36x256xf32, #tpu.memory_space<vmem>>, vector<4x256xf32>
    tpu.vector_store %arg6[%c28, %c0_30], %51 {strides = array<i32>} : memref<36x256xf32, #tpu.memory_space<vmem>>, vector<4x256xf32>,
    %c0_31 = arith.constant 0 : index
    %c34 = arith.constant 34 : index
    %53 = vector.load %arg5[%c0_31, %c34] : memref<4x290xf32, #tpu.memory_space<vmem>>, vector<4x256xf32>
    %54 = arith.mulf %53, %31 : vector<4x256xf32>
    %c32_32 = arith.constant 32 : index
    %c0_33 = arith.constant 0 : index
    %55 = vector.load %arg6[%c32_32, %c0_33] : memref<36x256xf32, #tpu.memory_space<vmem>>, vector<4x256xf32>
    tpu.vector_store %arg6[%c32_32, %c0_33], %54 {strides = array<i32>} : memref<36x256xf32, #tpu.memory_space<vmem>>, vector<4x256xf32>,
    %c0_34 = arith.constant 0 : index
    %c0_35 = arith.constant 0 : index
    %56 = vector.load %arg2[%c0_34, %c0_35] : memref<8x36xf32, #tpu.memory_space<vmem>>, vector<8x36xf32>
    %c0_36 = arith.constant 0 : index
    %c0_37 = arith.constant 0 : index
    %57 = vector.load %arg6[%c0_36, %c0_37] : memref<36x256xf32, #tpu.memory_space<vmem>>, vector<36x256xf32>
    %cst_38 = arith.constant dense<0.000000e+00> : vector<8x256xf32>
    %58 = tpu.matmul %56, %57, %cst_38 {dimension_numbers = #tpu.dot_dimension_numbers<[1], [0], [0], [1], [0, 0, 1, 1], [], []>} : vector<8x36xf32>, vector<36x256xf32>, vector<8x256xf32> -> vector<8x256xf32>
    %c0_39 = arith.constant 0 : index
    %c0_40 = arith.constant 0 : index
    %59 = vector.load %arg3[%c0_39, %c0_40] : memref<8x1xf32, #tpu.memory_space<vmem>>, vector<8x1xf32>
    %60 = vector.broadcast %59 : vector<8x1xf32> to vector<8x256xf32>
    %61 = arith.addf %58, %60 : vector<8x256xf32>
    %cst_41 = arith.constant 3.000000e+00 : f32
    %62 = vector.broadcast %cst_41 : f32 to vector<8x256xf32>
    %63 = arith.addf %61, %62 : vector<8x256xf32>
    %cst_42 = arith.constant 0.000000e+00 : f32
    %cst_43 = arith.constant 6.000000e+00 : f32
    %64 = vector.broadcast %cst_42 : f32 to vector<8x256xf32>
    %65 = arith.maximumf %64, %63 : vector<8x256xf32>
    %66 = vector.broadcast %cst_43 : f32 to vector<8x256xf32>
    %67 = arith.minimumf %66, %65 : vector<8x256xf32>
    %68 = arith.mulf %61, %67 : vector<8x256xf32>
    %cst_44 = arith.constant 0.166666672 : f32
    %69 = vector.broadcast %cst_44 : f32 to vector<8x256xf32>
    %70 = arith.mulf %68, %69 : vector<8x256xf32>
    %c0_45 = arith.constant 0 : index
    %c0_46 = arith.constant 0 : index
    %c0_47 = arith.constant 0 : index
    %71 = vector.load %arg4[%c0_45, %c0_46, %c0_47] : memref<1x8x256xf32, #tpu.memory_space<vmem>>, vector<1x8x256xf32>
    %72 = vector.shape_cast %71 : vector<1x8x256xf32> to vector<8x256xf32>
    %73 = vector.shape_cast %70 : vector<8x256xf32> to vector<1x8x256xf32>
    tpu.vector_store %arg4[%c0_45, %c0_46, %c0_47], %73 {strides = array<i32>} : memref<1x8x256xf32, #tpu.memory_space<vmem>>, vector<1x8x256xf32>,
    return
  }
  func.func @transform_0(%arg0: i32) -> (i32, i32, i32) {
    %c0_i32 = arith.constant 0 : i32
    %c0_i32_0 = arith.constant 0 : i32
    %c0_i32_1 = arith.constant 0 : i32
    return %arg0, %c0_i32, %c0_i32_0 : i32, i32, i32
  }
  func.func @transform_1(%arg0: i32) -> (i32, i32) {
    %c0_i32 = arith.constant 0 : i32
    %c0_i32_0 = arith.constant 0 : i32
    %c0_i32_1 = arith.constant 0 : i32
    return %c0_i32, %c0_i32_0 : i32, i32
  }
  func.func @transform_2(%arg0: i32) -> (i32, i32) {
    %c0_i32 = arith.constant 0 : i32
    %c0_i32_0 = arith.constant 0 : i32
    %c0_i32_1 = arith.constant 0 : i32
    return %c0_i32, %c0_i32_0 : i32, i32
  }
  func.func @transform_3(%arg0: i32) -> (i32, i32, i32) {
    %c0_i32 = arith.constant 0 : i32
    %c0_i32_0 = arith.constant 0 : i32
    %c0_i32_1 = arith.constant 0 : i32
    return %arg0, %c0_i32, %c0_i32_0 : i32, i32, i32
  }
}

</mosaic_0001>

<bundles_post_ra>
// kernel: baseconv_forward.1
= control target key start
LH: loop header
LB: loop body
LE: loop exit
PB: predicated region body
PF: predicated region fallthrough
CT: control target
= control target key end

     0   :  { %s702_s12 = smov 0   ;;  %s767_s0 = inlined_call_operand.vmem [shape: f32[2,4,256], index: 0, kind: input, shape index: {}]   ;;  %s768_s1 = inlined_call_operand.vmem [shape: f32[8,36], index: 1, kind: input, shape index: {}]   ;;  %s769_s2 = inlined_call_operand.vmem [shape: f32[8,1], index: 2, kind: input, shape index: {}]   ;;  %s770_s3 = inlined_call_operand.vmem [shape: f32[2,8,256], index: 3, kind: output, shape index: {}]  }
   0x1 LB: > { %s601_s13 = sadd.s32 4294967295, %s664_s12   ;;  %p605_p0 = scmp.ge.s32.totalorder %s664_s12, 1  ;;  %s664_s12 = sphi %s702_s12, %s13_s12  }
   0x2   : > { %p137_p1 = scmp.lt.s32.totalorder %s664_s12, 3 }
   0x4   : > { %p138_p2 = pnand %p605_p0, %p137_p1 }
   0x5   : > { %p161_p3 = scmp.lt.s32.totalorder (!%p138_p2), %s601_s13, 1  ;;  %v189_v0 = vlaneseq (!%p138_p2)  ;;  %vm171_vm0 = vcmask (!%p138_p2), 134144   ;;  %vm173_vm1 = vcmask (!%p138_p2), 273544   ;;  %v666_v1 = vmov (!%p138_p2), 0.0   ;;  %s667_s18 = smov (!%p138_p2), 17   ;;  %v446_v62 = vld [vmem:[%s769_s2] sm:$0xff] (!%p138_p2) }
   0x6   : > { %141 = sbr.rel (%p138_p2) target bundleno = 539 (0x21b), region = 32  ;;  %172 = vst.msk [vmem:[#allocation2] sm:$0xf] (!%p138_p2), %vm171_vm0, %v666_v1  ;;  %527 = vmatprep.mubr.f32.mxu0 (!%p138_p2), %v666_v1  ;;  %s668_s19 = smov (!%p138_p2), 16   ;;  %vm184_vm6 = vcmask (!%p138_p2), 1043592   ;;  %vm185_vm7 = vcmask (!%p138_p2), 1047556  }
   0x7   : > { %174 = vst.msk [vmem:[#allocation2 + $0x8] sm:$0xf] (!%p138_p2), %vm173_vm1, %v666_v1  ;;  %v190_v2 = vand.u32 (!%p138_p2), 127, %v189_v0  ;;  %s669_s20 = smov (!%p138_p2), 2   ;;  %s670_s21 = smov (!%p138_p2), 32   ;;  %vm180_vm8 = vcmask (!%p138_p2), 138240   ;;  %vm186_vm9 = vmor (!%p138_p2), %vm185_vm7, %vm184_vm6 }
   0x8   : > { %s671_s22 = smov (!%p138_p2), 18   ;;  %s672_s23 = smov (!%p138_p2), 34   ;;  %vm266_vm10 = vcmask (!%p138_p2), 15360   ;;  %vm293_vm11 = vcmask (!%p138_p2), 130048   ;;  %vm339_vm12 = vcmask (!%p138_p2), 146432   ;;  %vm367_vm13 = vcmask (!%p138_p2), 261120  }
   0x9   : > { %v191_v3 = vadd.s32 (!%p138_p2), 128, %v190_v2  ;;  %v196_v4 = vand.u32 (!%p138_p2), 15, %v190_v2  ;;  %s673_s24 = smov (!%p138_p2), 95   ;;  %s674_s25 = smov (!%p138_p2), 111   ;;  %vm413_vm14 = vcmask (!%p138_p2), 277504   ;;  %v681_v61 = vmov (!%p138_p2), 0  }
   0xa   : > { %s675_s26 = smov (!%p138_p2), 127   ;;  %s676_s27 = smov (!%p138_p2), 96   ;;  %653 = vset.pattern.permute.xlu0 (!%p138_p2), %v681_v61  ;;  %vm251_vm15 = vcmask (!%p138_p2), 1039360   ;;  %vm327_vm1 = vcmask (!%p138_p2), 908288   ;;  %vm428_vm6 = vcmask (!%p138_p2), 769024   ;;  %vm456_vm7 = vcmask (!%p138_p2), 1043456  }
   0xb   : > { %v203_v6 = vand.u32 (!%p138_p2), 15, %v191_v3  ;;  %vm216_vm2 = vcmp.ne.s32.totalorder (!%p138_p2), %v196_v4, 0  ;;  %vm222_vm3 = vcmp.ne.s32.totalorder (!%p138_p2), %v196_v4, 15  ;;  %s677_s28 = smov (!%p138_p2), 126   ;;  %s678_s29 = smov (!%p138_p2), 112  }
   0xc   : > { %v610_v7 = vsel (!%p138_p2), %vm216_vm2, 1.0, %v666_v1  ;;  %v612_v8 = vsel (!%p138_p2), %vm222_vm3, 1.0, %v666_v1  ;;  %s679_s30 = smov (!%p138_p2), 110   ;;  %s680_s4 = smov (!%p138_p2), 94   ;;  %vm355_vm2 = vcmask (!%p138_p2), 900096   ;;  %vm281_vm3 = vcmask (!%p138_p2), 1031168  }
   0xd   : > { %s772_s13 = smov (!%p161_p3, %s601_s13), 1  ;;  %vm217_vm4 = vcmp.ne.s32.totalorder %v203_v6, 0  ;;  %vm223_vm5 = vcmp.ne.s32.totalorder %v203_v6, 15 }
   0xe   : > { %s619_s14 = sshll.u32 %s772_s13, 3  ;;  %v611_v9 = vsel %vm217_vm4, 1.0, %v666_v1  ;;  %v613_v10 = vsel %vm223_vm5, 1.0, %v666_v1  ;;  %vm309_vm4 = vcmask 916480   ;;  %vm382_vm5 = vcmask 785408   ;;  %s620_s9 = sshll.u32 %s772_s13, 4 }
   0xf   : > { %s165_s17 = scalar_lea.vmem %s767_s0, %s619_s14  ;;  %v231_v11 = vcombine.low %v610_v7, %v611_v9  ;;  %v262_v12 = vcombine.low %v612_v8, %v613_v10  ;;  %s170_s14 = scalar_lea.vmem %s770_s3, %s620_s9 }
  0x10   : > { %v175_v5 = vld [vmem:[%s165_s17] sm:$0xff] }
  0x11   : > { %177 = vrot.lane.b32.xlu0 %v175_v5, %s667_s18  ;;  %290 = vrot.lane.b32.xlu1 %v231_v11, %s668_s19 }
  0x15   : > { %263 = vrot.lane.b32.xlu0 %v262_v12, %s669_s20  ;;  %364 = vrot.lane.b32.xlu1 %v231_v11, %s670_s21 }
  0x19   : > { %336 = vrot.lane.b32.xlu0 %v262_v12, %s671_s22  ;;  %410 = vrot.lane.b32.xlu1 %v262_v12, %s672_s23 }
  0x83   : > { %v178_v13 = vpop.permute.xlu0 %177  ;;  %v291_v16 = vpop.permute.xlu1 %290 }
  0x84   : > { %v179_v14 = vrot.slane %v178_v13, 4  ;;  %v292_v29 = vrot.slane %v291_v16, 4 }
  0x86   : > { %v181_v15 = vsel %vm180_vm8, %v179_v14, %v178_v13  ;;  %188 = vst.msk [vmem:[#allocation2 + $0x8] sm:$0xf] %vm171_vm0, %v179_v14  ;;  %v294_v33 = vsel %vm293_vm11, %v292_v29, %v291_v16  ;;  %vm401_vm0 = vcmask 777216   ;;  %vm452_vm8 = vcmask 293888  }
  0x87   : > { %187 = vst.msk [vmem:[#allocation2] sm:$0xff] %vm186_vm9, %v181_v15  ;;  %v365_v18 = vpop.permute.xlu1 %364  ;;  %v264_v23 = vpop.permute.xlu0 %263 }
  0x88   : > { %v366_v20 = vrot.slane %v365_v18, 4  ;;  %v265_v25 = vrot.slane %v264_v23, 4 }
  0x8a   : > { %v267_v31 = vsel %vm266_vm10, %v265_v25, %v264_v23  ;;  %v368_v45 = vsel %vm367_vm13, %v366_v20, %v365_v18 }
  0x8b   : > { %v337_v34 = vpop.permute.xlu0 %336  ;;  %v411_v47 = vpop.permute.xlu1 %410 }
  0x8c   : > { %v338_v37 = vrot.slane %v337_v34, 4  ;;  %v412_v50 = vrot.slane %v411_v47, 4 }
  0x8d   : > { %v317_v19 = vld [vmem:[#allocation2 + $0x8] sm:$0xf] }
  0x8e   : > { %v718_v17 = vld [vmem:[#allocation2] sm:$0xff]  ;;  %325 = vrot.lane.b32.xlu0 %v317_v19, %s674_s25  ;;  %v363_v22 = vld [vmem:[#allocation2 + $0x8] sm:$0xf]  ;;  %v340_v40 = vsel %vm339_vm12, %v338_v37, %v337_v34  ;;  %v414_v53 = vsel %vm413_vm14, %v412_v50, %v411_v47 }
  0x8f   : > { %397 = vrot.lane.b32.xlu1 %v718_v17, %s673_s24  ;;  %v233_v21 = vmul.f32 %v231_v11, %v718_v17  ;;  %v656_v26 = vld [vmem:[#allocation2 + $0x8] ss:$0 sps:$4 sm:$0xff]   ;;  %v372_v28 = vmul.f32 %v366_v20, %v363_v22  ;;  %v270_v35 = vmul.f32 %v267_v31, %v718_v17  ;;  %v297_v36 = vmul.f32 %v294_v33, %v718_v17 }
  0x90   : > { %v259_v27 = vld [vmem:[#allocation2 + $0x8] sm:$0xf]  ;;  %v320_v39 = vcombine.high %v718_v17, %v718_v17  ;;  %v393_v42 = vcombine.low %v718_v17, %v718_v17  ;;  %v343_v43 = vmul.f32 %v340_v40, %v718_v17  ;;  %v371_v49 = vmul.f32 %v368_v45, %v718_v17 }
  0x91   : > { %v235_v24 = vcombine.high %v233_v21, %v233_v21  ;;  %237 = vst [vmem:[#allocation3] sm:$0xf] %v233_v21  ;;  %v271_v30 = vmul.f32 %v265_v25, %v259_v27  ;;  %v657_v32 = vld [vmem:[#allocation2 + $0x8] ss:$0 sps:$4 sm:$0xff]   ;;  %v274_v51 = vcombine.high %v270_v35, %v270_v35  ;;  %v301_v54 = vcombine.low %v297_v36, %v297_v36 }
  0x92   : > { %247 = vrot.lane.b32.xlu0 %v718_v17, %s675_s26  ;;  %v335_v38 = vld [vmem:[#allocation2 + $0x8] sm:$0xf]  ;;  %v417_v55 = vmul.f32 %v414_v53, %v718_v17  ;;  %v375_v56 = vcombine.high %v371_v49, %v371_v49  ;;  %v347_v57 = vcombine.low %v343_v43, %v343_v43  ;;  %v435_v53 = vld [vmem:[%s768_s1] sm:$0xff] }
  0x93   : > { %321 = vrot.lane.b32.xlu1 %v718_v17, %s674_s25  ;;  %238 = vst [vmem:[#allocation3 + $0x8] sm:$0xf] %v235_v24  ;;  %v344_v41 = vmul.f32 %v338_v37, %v335_v38  ;;  %v289_v44 = vld [vmem:[#allocation2 + $0x8] sm:$0xf] }
  0x94   : > { %v298_v48 = vmul.f32 %v292_v29, %v289_v44  ;;  %v421_v58 = vcombine.high %v417_v55, %v417_v55  ;;  %v409_v59 = vld [vmem:[#allocation2 + $0x8] sm:$0xf] }
  0x95   : > { %v348_v46 = vcombine.low %v344_v41, %v344_v41  ;;  %v418_v60 = vmul.f32 %v412_v50, %v409_v59 }
  0x96   : > { %380 = vrot.lane.b32.xlu0 %v372_v28, %s676_s27  ;;  %v302_v52 = vcombine.low %v298_v48, %v298_v48 }
  0x97   : > { %249 = vrot.lane.b32.xlu1 %v656_v26, %s675_s26 }
  0x9a   : > { %399 = vrot.lane.b32.xlu0 %v657_v32, %s673_s24 }
  0x9b   : > { %279 = vrot.lane.b32.xlu1 %v271_v30, %s677_s28 }
  0x9e   : > { %305 = vrot.lane.b32.xlu0 %v297_v36, %s678_s29 }
  0x9f   : > { %275 = vrot.lane.b32.xlu1 %v270_v35, %s677_s28 }
  0xa2   : > { %245 = vrot.lane.b32.xlu0 %v393_v42, %s675_s26 }
  0xa3   : > { %323 = vrot.lane.b32.xlu1 %v320_v39, %s674_s25 }
  0xa6   : > { %353 = vrot.lane.b32.xlu0 %v348_v46, %s679_s30 }
  0xa7   : > { %351 = vrot.lane.b32.xlu1 %v343_v43, %s679_s30 }
  0xaa   : > { %277 = vrot.lane.b32.xlu0 %v274_v51, %s677_s28 }
  0xab   : > { %376 = vrot.lane.b32.xlu1 %v371_v49, %s676_s27 }
  0xae   : > { %303 = vrot.lane.b32.xlu0 %v301_v54, %s678_s29 }
  0xaf   : > { %307 = vrot.lane.b32.xlu1 %v302_v52, %s678_s29 }
  0xb2   : > { %349 = vrot.lane.b32.xlu0 %v347_v57, %s679_s30 }
  0xb3   : > { %378 = vrot.lane.b32.xlu1 %v375_v56, %s676_s27 }
  0xb6   : > { %395 = vrot.lane.b32.xlu0 %v393_v42, %s673_s24 }
  0xb7   : > { %424 = vrot.lane.b32.xlu1 %v421_v58, %s680_s4 }
  0xba   : > { %426 = vrot.lane.b32.xlu0 %v418_v60, %s680_s4 }
  0xbb   : > { %422 = vrot.lane.b32.xlu1 %v417_v55, %s680_s4 }
  0xbe   : > { %449 = vperm.xlu0 %653, %v446_v62  }
 0x100   : > { %v326_v0 = vpop.permute.xlu0 %325 }
 0x101   : > { %v398_v63 = vpop.permute.xlu1 %397 }
 0x104   : > { %v248_v2 = vpop.permute.xlu0 %247 }
 0x105   : > { %v322_v1 = vpop.permute.xlu1 %321 }
 0x108   : > { %v381_v4 = vpop.permute.xlu0 %380 }
 0x109   : > { %v250_v3 = vpop.permute.xlu1 %249 }
 0x10a   : > { %v253_v5 = vsel %vm251_vm15, %v248_v2, %v250_v3 }
 0x10b   : > { %257 = vst [vmem:[#allocation3 + $0x8] sm:$0xf0] %v253_v5 }
 0x10c   : > { %v400_v7 = vpop.permute.xlu0 %399 }
 0x10d   : > { %v280_v6 = vpop.permute.xlu1 %279  ;;  %v403_v8 = vsel %vm401_vm0, %v398_v63, %v400_v7 }
 0x10e   : > { %407 = vst [vmem:[#allocation3 + $0x38] sm:$0xf0] %v403_v8 }
 0x110   : > { %v306_v10 = vpop.permute.xlu0 %305 }
 0x111   : > { %v276_v9 = vpop.permute.xlu1 %275 }
 0x112   : > { %v437_v34 = vld [vmem:[#allocation3 + $0x8] sm:$0xff] }
 0x114   : > { %v246_v12 = vpop.permute.xlu0 %245 }
 0x115   : > { %v324_v11 = vpop.permute.xlu1 %323  ;;  %v252_v15 = vsel %vm251_vm15, %v246_v12, %v248_v2 }
 0x116   : > { %v328_v13 = vsel %vm327_vm1, %v322_v1, %v324_v11  ;;  %v329_v14 = vsel %vm327_vm1, %v324_v11, %v326_v0  ;;  %256 = vst [vmem:[#allocation3] sm:$0xf0] %v252_v15 }
 0x117   : > { %332 = vst [vmem:[#allocation3 + $0x20] sm:$0xf] %v328_v13  ;;  %333 = vst [vmem:[#allocation3 + $0x28] sm:$0xf] %v329_v14 }
 0x118   : > { %v354_v17 = vpop.permute.xlu0 %353 }
 0x119   : > { %v352_v16 = vpop.permute.xlu1 %351 }
 0x11a   : > { %v357_v18 = vsel %vm355_vm2, %v352_v16, %v354_v17 }
 0x11b   : > { %361 = vst [vmem:[#allocation3 + $0x28] sm:$0xf0] %v357_v18 }
 0x11c   : > { %v278_v20 = vpop.permute.xlu0 %277 }
 0x11d   : > { %v377_v19 = vpop.permute.xlu1 %376  ;;  %v282_v21 = vsel %vm281_vm3, %v276_v9, %v278_v20  ;;  %v283_v22 = vsel %vm281_vm3, %v278_v20, %v280_v6  ;;  %v436_v38 = vld [vmem:[#allocation3] sm:$0xff] }
 0x11e   : > { %286 = vst [vmem:[#allocation3 + $0x10] sm:$0xf] %v282_v21  ;;  %287 = vst [vmem:[#allocation3 + $0x18] sm:$0xf] %v283_v22 }
 0x120   : > { %v304_v24 = vpop.permute.xlu0 %303 }
 0x121   : > { %v308_v23 = vpop.permute.xlu1 %307  ;;  %v310_v26 = vsel %vm309_vm4, %v304_v24, %v306_v10 }
 0x122   : > { %v311_v25 = vsel %vm309_vm4, %v306_v10, %v308_v23  ;;  %314 = vst [vmem:[#allocation3 + $0x10] sm:$0xf0] %v310_v26  ;;  %v441_v44 = vld [vmem:[#allocation3 + $0x28] sm:$0xff] }
 0x123   : > { %315 = vst [vmem:[#allocation3 + $0x18] sm:$0xf0] %v311_v25 }
 0x124   : > { %v350_v28 = vpop.permute.xlu0 %349 }
 0x125   : > { %v379_v27 = vpop.permute.xlu1 %378  ;;  %v356_v31 = vsel %vm355_vm2, %v350_v28, %v352_v16 }
 0x126   : > { %v383_v29 = vsel %vm382_vm5, %v377_v19, %v379_v27  ;;  %v384_v30 = vsel %vm382_vm5, %v379_v27, %v381_v4  ;;  %360 = vst [vmem:[#allocation3 + $0x20] sm:$0xf0] %v356_v31 }
 0x127   : > { %387 = vst [vmem:[#allocation3 + $0x30] sm:$0xf] %v383_v29  ;;  %388 = vst [vmem:[#allocation3 + $0x38] sm:$0xf] %v384_v30 }
 0x128   : > { %v396_v33 = vpop.permute.xlu0 %395 }
 0x129   : > { %v425_v32 = vpop.permute.xlu1 %424  ;;  %v402_v36 = vsel %vm401_vm0, %v396_v33, %v398_v63  ;;  %v438_v39 = vld [vmem:[#allocation3 + $0x10] sm:$0xff] }
 0x12a   : > { %v439_v35 = vld [vmem:[#allocation3 + $0x18] sm:$0xff]  ;;  %406 = vst [vmem:[#allocation3 + $0x30] sm:$0xf0] %v402_v36  ;;  %v623_v40 = vpack.c.bf16 %v438_v39, %v436_v38 }
 0x12b   : > { %v621_v37 = vpack.c.bf16 %v439_v35, %v437_v34 }
 0x12c   : > { %v427_v42 = vpop.permute.xlu0 %426 }
 0x12d   : > { %v423_v41 = vpop.permute.xlu1 %422  ;;  %622 = vmatprep.subr.bf16.mxu0 %v621_v37  ;;  %v430_v46 = vsel %vm428_vm6, %v425_v32, %v427_v42  ;;  %v440_v48 = vld [vmem:[#allocation3 + $0x20] sm:$0xff] }
 0x12e   : > { %v429_v43 = vsel %vm428_vm6, %v423_v41, %v425_v32  ;;  %624 = vmatpush1.bf16.msra.mxu0 %v623_v40  ;;  %v443_v45 = vld [vmem:[#allocation3 + $0x38] sm:$0xff]  ;;  %434 = vst [vmem:[#allocation3 + $0x48] sm:$0xf] %v430_v46 }
 0x12f   : > { %433 = vst [vmem:[#allocation3 + $0x40] sm:$0xf] %v429_v43  ;;  %v625_v47 = vpack.c.bf16 %v443_v45, %v441_v44 }
 0x131   : > { %626 = vmatprep.subr.bf16.mxu0 %v625_v47  ;;  %v442_v49 = vld [vmem:[#allocation3 + $0x30] sm:$0xff] }
 0x132   : > { %v627_v50 = vpack.c.bf16 %v442_v49, %v440_v48 }
 0x134   : > { %628 = vmatpush1.bf16.msra.mxu0 %v627_v50 }
 0x135   : > { %v445_v51 = vld [vmem:[#allocation3 + $0x48] sm:$0xf] }
 0x136   : > { %v444_v52 = vld [vmem:[#allocation3 + $0x40] sm:$0xf]  ;;  %614 = vmatprep.subr.msk.mxu0 %vm456_vm7, %v445_v51 }
 0x138   : > { %615 = vmatpush1.msk.msra.mxu0 %vm456_vm7, %v444_v52 }
 0x139   : > { %616 = vmatmul.mubr.msk.f32.vlgmr.msra.gmra.mrb[0].mxu0 %vm452_vm8, %v435_v53 }
 0x13d   : > { %v450_v54 = vpop.permute.xlu0 %449 }
 0x20c   : > { %v529_v55 = vpop.f32.mrb[0].mxu0 }
 0x20d   : > { %v530_v56 = vadd.f32 %v529_v55, %v450_v54  ;;  %v531_v57 = vpop.f32.mrb[1].mxu0 }
 0x20e   : > { %v532_v58 = vadd.f32 %v531_v57, %v450_v54 }
 0x20f   : > { %v534_v59 = vadd.f32 3.0, %v530_v56 }
 0x210   : > { %v535_v60 = vadd.f32 3.0, %v532_v58 }
 0x211   : > { %v536_v61 = vmax.f32 %v534_v59, 0.0 }
 0x212   : > { %v537_v62 = vmax.f32 %v535_v60, 0.0 }
 0x213   : > { %v538_v63 = vmin.f32 %v536_v61, 6.0 }
 0x214   : > { %v539_v0 = vmin.f32 %v537_v62, 6.0 }
 0x215   : > { %v540_v1 = vmul.f32 %v538_v63, %v530_v56 }
 0x216   : > { %v541_v2 = vmul.f32 %v539_v0, %v532_v58 }
 0x217   : > { %v542_v3 = vmul.f32 0.16666667, %v540_v1 }
 0x218   : > { %v543_v4 = vmul.f32 0.16666667, %v541_v2 }
 0x219   : > { %544 = vst [vmem:[%s170_s14] sm:$0xff] %v542_v3 }
 0x21a   : > { %545 = vst [vmem:[%s170_s14 + $0x8] sm:$0xff] %v543_v4 }
 0x21b PF: > { %s13_s12 = sadd.s32 1, %s664_s12  }
 0x21c   : > { %p10_p4 = scmp.ge.s32.totalorder %s13_s12, 4  }
 0x21e   :  { %12 = sbr.rel (!%p10_p4) target bundleno = 1 (0x1), region = 62 }

</bundles_post_ra>
